<compile_context>
chip_gen: v7x
topology: tpu7x:2x2x1
jax: 0.10.0
libtpu: 0.0.40
codegen_flags: <defaults>
</compile_context>

<pallas_src>
import functools

import jax
import jax.numpy as jnp
from jax.experimental import pallas as pl
from jax.experimental.pallas import tpu as pltpu

D_IN, D_H1, D_H2, D_H3, D_OUT = 256, 128, 64, 32, 10


def _mlp_kernel(x_ref,
                w1_ref, b1_ref,
                w2_ref, b2_ref,
                w3_ref, b3_ref,
                w4_ref, b4_ref,
                o_ref):
    """Forward pass for one (B_TILE, 256) batch tile; weights are VMEM-resident bf16."""
    # bf16 on the MXU path, f32 accumulation (preferred_element_type) and f32 bias add.
    x = x_ref[...].astype(jnp.bfloat16)                              # [B_TILE, 256]

    # layer1 + ReLU
    h1 = jnp.dot(x, w1_ref[...], preferred_element_type=jnp.float32) + b1_ref[...]
    h1 = jnp.maximum(h1, 0.0).astype(jnp.bfloat16)

    # layer2 + ReLU
    h2 = jnp.dot(h1, w2_ref[...], preferred_element_type=jnp.float32) + b2_ref[...]
    h2 = jnp.maximum(h2, 0.0).astype(jnp.bfloat16)

    # layer3 + Sigmoid
    h3 = jnp.dot(h2, w3_ref[...], preferred_element_type=jnp.float32) + b3_ref[...]
    h3 = jax.nn.sigmoid(h3).astype(jnp.bfloat16)

    # layer4 (no activation), narrow 10-wide output in f32.
    out = jnp.dot(h3, w4_ref[...], preferred_element_type=jnp.float32) + b4_ref[...]
    o_ref[...] = out.astype(o_ref.dtype)


@functools.partial(jax.jit, static_argnames=("b_tile",))
def fully_connected_forward(x, params, *, b_tile=2048):
    """x: [B, C, H, W] with C*H*W == 256 (NCHW, like PyTorch). Returns [B, 10] f32."""
    (w1, b1), (w2, b2), (w3, b3), (w4, b4) = params
    B = x.shape[0]
    x_flat = x.reshape(B, -1)                                        # x.view(B, -1)
    if x_flat.dtype != jnp.bfloat16:
        # Keep activations in whatever precision they arrive in (bf16 stays bf16 to
        # halve the dominant x HBM read); otherwise read f32 and downcast in-kernel.
        x_flat = x_flat.astype(jnp.float32)

    # Tile the batch:
    #  * 8-row aligned,
    #  * aim for >= 4 grid steps (>= 2 per TensorCore on v7x) when B allows,
    #  * never larger than b_tile (default 2048 ~ 6-8 MiB of VMEM windows).
    b_aligned = ((B + 7) // 8) * 8
    quarter = ((b_aligned + 3) // 4 + 7) // 8 * 8
    B_TILE = max(8, min(b_tile, quarter))
    B_pad = ((B + B_TILE - 1) // B_TILE) * B_TILE
    if B_pad != B:
        x_flat = jnp.pad(x_flat, ((0, B_pad - B), (0, 0)))
    grid = (B_pad // B_TILE,)

    # Weights pre-cast to bf16 once (VMEM-resident); biases stay f32 as [1, out] rows.
    w1b = w1.astype(jnp.bfloat16)
    w2b = w2.astype(jnp.bfloat16)
    w3b = w3.astype(jnp.bfloat16)
    w4b = w4.astype(jnp.bfloat16)
    b1r = b1.reshape(1, D_H1).astype(jnp.float32)
    b2r = b2.reshape(1, D_H2).astype(jnp.float32)
    b3r = b3.reshape(1, D_H3).astype(jnp.float32)
    b4r = b4.reshape(1, D_OUT).astype(jnp.float32)

    # x / output move with the batch grid; weights/biases have a constant block
    # index, so Pallas keeps them resident in VMEM (no re-DMA per step).
    x_spec = pl.BlockSpec((B_TILE, D_IN), lambda i: (i, 0))
    resident = lambda shape: pl.BlockSpec(shape, lambda i: (0, 0))
    out_spec = pl.BlockSpec((B_TILE, D_OUT), lambda i: (i, 0))

    weight_bytes = 2 * (D_IN * D_H1 + D_H1 * D_H2 + D_H2 * D_H3 + D_H3 * D_OUT) \
        + 4 * (D_H1 + D_H2 + D_H3 + D_OUT)
    x_bytes = x_flat.dtype.itemsize
    cost = pl.CostEstimate(
        flops=2 * B_pad * (D_IN * D_H1 + D_H1 * D_H2 + D_H2 * D_H3 + D_H3 * D_OUT),
        transcendentals=B_pad * D_H3,                      # sigmoid on layer3
        bytes_accessed=B_pad * (x_bytes * D_IN + 4 * D_OUT) + weight_bytes,
    )

    out_padded = pl.pallas_call(
        _mlp_kernel,
        out_shape=jax.ShapeDtypeStruct((B_pad, D_OUT), jnp.float32),
        grid=grid,
        in_specs=[
            x_spec,
            resident((D_IN, D_H1)), resident((1, D_H1)),
            resident((D_H1, D_H2)), resident((1, D_H2)),
            resident((D_H2, D_H3)), resident((1, D_H3)),
            resident((D_H3, D_OUT)), resident((1, D_OUT)),
        ],
        out_specs=out_spec,
        compiler_params=pltpu.CompilerParams(
            dimension_semantics=("parallel",),    # megacore sharding on v7x
            vmem_limit_bytes=32 * 1024 * 1024,    # headroom over v5e's 16 MiB default
        ),
        cost_estimate=cost,
    )(x_flat, w1b, b1r, w2b, b2r, w3b, b3r, w4b, b4r)

    return out_padded[:B]


def init_params(key):
    """Deterministic init. Weights stored as [in, out] (transposed vs. PyTorch)."""
    dims = [(D_IN, D_H1), (D_H1, D_H2), (D_H2, D_H3), (D_H3, D_OUT)]
    params = []
    for (din, dout) in dims:
        key, kw, kb = jax.random.split(key, 3)
        bound = 1.0 / jnp.sqrt(din)  # matches nn.Linear's U(-1/sqrt(fan_in), +)
        w = jax.random.uniform(kw, (din, dout), jnp.float32, -bound, bound)
        b = jax.random.uniform(kb, (dout,), jnp.float32, -bound, bound)
        params.append((w, b))
    return params


def reference_forward(x, params):
    """Pure-JAX f32 reference for a sanity check (kernel uses bf16 matmuls)."""
    (w1, b1), (w2, b2), (w3, b3), (w4, b4) = params
    h = x.reshape(x.shape[0], -1).astype(jnp.float32)
    h = jnp.maximum(h @ w1 + b1, 0.0)
    h = jnp.maximum(h @ w2 + b2, 0.0)
    h = jax.nn.sigmoid(h @ w3 + b3)
    return h @ w4 + b4


if __name__ == "__main__":
    key = jax.random.PRNGKey(0)
    key, kx, kx2 = jax.random.split(key, 3)
    params = init_params(key)

    # Small NCHW input with C*H*W = 4*8*8 = 256, matching layer1's in_features.
    x = jax.random.normal(kx, (2, 4, 8, 8), jnp.float32)
    out = jax.block_until_ready(fully_connected_forward(x, params))
    ref = reference_forward(x, params)
    assert out.shape == (2, 10), out.shape
    # bf16 matmul path vs f32 reference -> loosened tolerance.
    assert jnp.allclose(out, ref, atol=3e-2, rtol=3e-2), "mismatch vs reference (B=2)"

    # Larger ragged batch to exercise the multi-tile grid + padding path.
    x_big = jax.random.normal(kx2, (1000, 4, 8, 8), jnp.float32)
    out_big = jax.block_until_ready(fully_connected_forward(x_big, params))
    ref_big = reference_forward(x_big, params)
    assert out_big.shape == (1000, 10), out_big.shape
    assert jnp.allclose(out_big, ref_big, atol=3e-2, rtol=3e-2), "mismatch vs reference (B=1000)"

    print("KERNEL_OK")
</pallas_src>

<mosaic_0001>
module attributes {stable_mosaic.version = 11 : i64} {
  func.func @_mlp_kernel(%arg0: i32, %arg1: memref<8x256xf32, #tpu.memory_space<vmem>>, %arg2: memref<256x128xbf16, #tpu.memory_space<vmem>>, %arg3: memref<1x128xf32, #tpu.memory_space<vmem>>, %arg4: memref<128x64xbf16, #tpu.memory_space<vmem>>, %arg5: memref<1x64xf32, #tpu.memory_space<vmem>>, %arg6: memref<64x32xbf16, #tpu.memory_space<vmem>>, %arg7: memref<1x32xf32, #tpu.memory_space<vmem>>, %arg8: memref<32x10xbf16, #tpu.memory_space<vmem>>, %arg9: memref<1x10xf32, #tpu.memory_space<vmem>>, %arg10: memref<8x10xf32, #tpu.memory_space<vmem>>) attributes {dimension_semantics = [#tpu.dimension_semantics<parallel>], iteration_bounds = array<i64: 1>, scalar_prefetch = 0 : i64, scratch_operands = 0 : i64, tpu.core_type = #tpu.core_type<tc>, window_params = [{transform_indices = @transform_0, window_bounds = array<i64: 8, 256>}, {pipeline_mode = #tpu.pipeline_mode<synchronous>, transform_indices = @transform_1, window_bounds = array<i64: 256, 128>}, {pipeline_mode = #tpu.pipeline_mode<synchronous>, transform_indices = @transform_2, window_bounds = array<i64: 1, 128>}, {pipeline_mode = #tpu.pipeline_mode<synchronous>, transform_indices = @transform_3, window_bounds = array<i64: 128, 64>}, {pipeline_mode = #tpu.pipeline_mode<synchronous>, transform_indices = @transform_4, window_bounds = array<i64: 1, 64>}, {pipeline_mode = #tpu.pipeline_mode<synchronous>, transform_indices = @transform_5, window_bounds = array<i64: 64, 32>}, {pipeline_mode = #tpu.pipeline_mode<synchronous>, transform_indices = @transform_6, window_bounds = array<i64: 1, 32>}, {pipeline_mode = #tpu.pipeline_mode<synchronous>, transform_indices = @transform_7, window_bounds = array<i64: 32, 10>}, {pipeline_mode = #tpu.pipeline_mode<synchronous>, transform_indices = @transform_8, window_bounds = array<i64: 1, 10>}, {transform_indices = @transform_9, window_bounds = array<i64: 8, 10>}]} {
    %c0 = arith.constant 0 : index
    %c0_0 = arith.constant 0 : index
    %0 = vector.load %arg1[%c0, %c0_0] : memref<8x256xf32, #tpu.memory_space<vmem>>, vector<8x256xf32>
    %1 = arith.truncf %0 : vector<8x256xf32> to vector<8x256xbf16>
    %c0_1 = arith.constant 0 : index
    %c0_2 = arith.constant 0 : index
    %2 = vector.load %arg2[%c0_1, %c0_2] : memref<256x128xbf16, #tpu.memory_space<vmem>>, vector<256x128xbf16>
    %cst = arith.constant dense<0.000000e+00> : vector<8x128xf32>
    %3 = tpu.matmul %1, %2, %cst {dimension_numbers = #tpu.dot_dimension_numbers<[1], [0], [0], [1], [0, 0, 1, 1], [], []>} : vector<8x256xbf16>, vector<256x128xbf16>, vector<8x128xf32> -> vector<8x128xf32>
    %c0_3 = arith.constant 0 : index
    %c0_4 = arith.constant 0 : index
    %4 = vector.load %arg3[%c0_3, %c0_4] : memref<1x128xf32, #tpu.memory_space<vmem>>, vector<1x128xf32>
    %5 = vector.broadcast %4 : vector<1x128xf32> to vector<8x128xf32>
    %6 = arith.addf %3, %5 : vector<8x128xf32>
    %cst_5 = arith.constant 0.000000e+00 : f32
    %7 = vector.broadcast %cst_5 : f32 to vector<8x128xf32>
    %8 = arith.maximumf %6, %7 : vector<8x128xf32>
    %9 = arith.truncf %8 : vector<8x128xf32> to vector<8x128xbf16>
    %c0_6 = arith.constant 0 : index
    %c0_7 = arith.constant 0 : index
    %10 = vector.load %arg4[%c0_6, %c0_7] : memref<128x64xbf16, #tpu.memory_space<vmem>>, vector<128x64xbf16>
    %cst_8 = arith.constant dense<0.000000e+00> : vector<8x64xf32>
    %11 = tpu.matmul %9, %10, %cst_8 {dimension_numbers = #tpu.dot_dimension_numbers<[1], [0], [0], [1], [0, 0, 1, 1], [], []>} : vector<8x128xbf16>, vector<128x64xbf16>, vector<8x64xf32> -> vector<8x64xf32>
    %c0_9 = arith.constant 0 : index
    %c0_10 = arith.constant 0 : index
    %12 = vector.load %arg5[%c0_9, %c0_10] : memref<1x64xf32, #tpu.memory_space<vmem>>, vector<1x64xf32>
    %13 = vector.broadcast %12 : vector<1x64xf32> to vector<8x64xf32>
    %14 = arith.addf %11, %13 : vector<8x64xf32>
    %cst_11 = arith.constant 0.000000e+00 : f32
    %15 = vector.broadcast %cst_11 : f32 to vector<8x64xf32>
    %16 = arith.maximumf %14, %15 : vector<8x64xf32>
    %17 = arith.truncf %16 : vector<8x64xf32> to vector<8x64xbf16>
    %c0_12 = arith.constant 0 : index
    %c0_13 = arith.constant 0 : index
    %18 = vector.load %arg6[%c0_12, %c0_13] : memref<64x32xbf16, #tpu.memory_space<vmem>>, vector<64x32xbf16>
    %cst_14 = arith.constant dense<0.000000e+00> : vector<8x32xf32>
    %19 = tpu.matmul %17, %18, %cst_14 {dimension_numbers = #tpu.dot_dimension_numbers<[1], [0], [0], [1], [0, 0, 1, 1], [], []>} : vector<8x64xbf16>, vector<64x32xbf16>, vector<8x32xf32> -> vector<8x32xf32>
    %c0_15 = arith.constant 0 : index
    %c0_16 = arith.constant 0 : index
    %20 = vector.load %arg7[%c0_15, %c0_16] : memref<1x32xf32, #tpu.memory_space<vmem>>, vector<1x32xf32>
    %21 = vector.broadcast %20 : vector<1x32xf32> to vector<8x32xf32>
    %22 = arith.addf %19, %21 : vector<8x32xf32>
    %23 = arith.negf %22 : vector<8x32xf32>
    %24 = math.exp %23 : vector<8x32xf32>
    %cst_17 = arith.constant 1.000000e+00 : f32
    %25 = vector.broadcast %cst_17 : f32 to vector<8x32xf32>
    %26 = arith.addf %25, %24 : vector<8x32xf32>
    %27 = arith.divf %25, %26 : vector<8x32xf32>
    %28 = arith.truncf %27 : vector<8x32xf32> to vector<8x32xbf16>
    %c0_18 = arith.constant 0 : index
    %c0_19 = arith.constant 0 : index
    %29 = vector.load %arg8[%c0_18, %c0_19] : memref<32x10xbf16, #tpu.memory_space<vmem>>, vector<32x10xbf16>
    %cst_20 = arith.constant dense<0.000000e+00> : vector<8x10xf32>
    %30 = tpu.matmul %28, %29, %cst_20 {dimension_numbers = #tpu.dot_dimension_numbers<[1], [0], [0], [1], [0, 0, 1, 1], [], []>} : vector<8x32xbf16>, vector<32x10xbf16>, vector<8x10xf32> -> vector<8x10xf32>
    %c0_21 = arith.constant 0 : index
    %c0_22 = arith.constant 0 : index
    %31 = vector.load %arg9[%c0_21, %c0_22] : memref<1x10xf32, #tpu.memory_space<vmem>>, vector<1x10xf32>
    %32 = vector.broadcast %31 : vector<1x10xf32> to vector<8x10xf32>
    %33 = arith.addf %30, %32 : vector<8x10xf32>
    %c0_23 = arith.constant 0 : index
    %c0_24 = arith.constant 0 : index
    %34 = vector.load %arg10[%c0_23, %c0_24] : memref<8x10xf32, #tpu.memory_space<vmem>>, vector<8x10xf32>
    tpu.vector_store %arg10[%c0_23, %c0_24], %33 {strides = array<i32>} : memref<8x10xf32, #tpu.memory_space<vmem>>, vector<8x10xf32>,
    return
  }
  func.func @transform_0(%arg0: i32) -> (i32, i32) {
    %c0_i32 = arith.constant 0 : i32
    %c0_i32_0 = arith.constant 0 : i32
    return %arg0, %c0_i32 : i32, i32
  }
  func.func @transform_1(%arg0: i32) -> (i32, i32) {
    %c0_i32 = arith.constant 0 : i32
    %c0_i32_0 = arith.constant 0 : i32
    %c0_i32_1 = arith.constant 0 : i32
    return %c0_i32, %c0_i32_0 : i32, i32
  }
  func.func @transform_2(%arg0: i32) -> (i32, i32) {
    %c0_i32 = arith.constant 0 : i32
    %c0_i32_0 = arith.constant 0 : i32
    %c0_i32_1 = arith.constant 0 : i32
    return %c0_i32, %c0_i32_0 : i32, i32
  }
  func.func @transform_3(%arg0: i32) -> (i32, i32) {
    %c0_i32 = arith.constant 0 : i32
    %c0_i32_0 = arith.constant 0 : i32
    %c0_i32_1 = arith.constant 0 : i32
    return %c0_i32, %c0_i32_0 : i32, i32
  }
  func.func @transform_4(%arg0: i32) -> (i32, i32) {
    %c0_i32 = arith.constant 0 : i32
    %c0_i32_0 = arith.constant 0 : i32
    %c0_i32_1 = arith.constant 0 : i32
    return %c0_i32, %c0_i32_0 : i32, i32
  }
  func.func @transform_5(%arg0: i32) -> (i32, i32) {
    %c0_i32 = arith.constant 0 : i32
    %c0_i32_0 = arith.constant 0 : i32
    %c0_i32_1 = arith.constant 0 : i32
    return %c0_i32, %c0_i32_0 : i32, i32
  }
  func.func @transform_6(%arg0: i32) -> (i32, i32) {
    %c0_i32 = arith.constant 0 : i32
    %c0_i32_0 = arith.constant 0 : i32
    %c0_i32_1 = arith.constant 0 : i32
    return %c0_i32, %c0_i32_0 : i32, i32
  }
  func.func @transform_7(%arg0: i32) -> (i32, i32) {
    %c0_i32 = arith.constant 0 : i32
    %c0_i32_0 = arith.constant 0 : i32
    %c0_i32_1 = arith.constant 0 : i32
    return %c0_i32, %c0_i32_0 : i32, i32
  }
  func.func @transform_8(%arg0: i32) -> (i32, i32) {
    %c0_i32 = arith.constant 0 : i32
    %c0_i32_0 = arith.constant 0 : i32
    %c0_i32_1 = arith.constant 0 : i32
    return %c0_i32, %c0_i32_0 : i32, i32
  }
  func.func @transform_9(%arg0: i32) -> (i32, i32) {
    %c0_i32 = arith.constant 0 : i32
    %c0_i32_0 = arith.constant 0 : i32
    return %arg0, %c0_i32 : i32, i32
  }
}

</mosaic_0001>

<bundles_post_ra>
// kernel: fully_connected_forward.1
= control target key start
LH: loop header
LB: loop body
LE: loop exit
PB: predicated region body
PF: predicated region fallthrough
CT: control target
= control target key end

     0   :  { %v642_v1 = vmov 0.0   ;;  %vm643_vm0 = vmmov 0   ;;  %vm366_vm1 = vcmask 523264   ;;  %vm440_vm2 = vcmask 261120   ;;  %s825_s1 = inlined_call_operand.vmem [shape: bf16[256,128], index: 1, kind: input, shape index: {}]   ;;  %s826_s0 = inlined_call_operand.vmem [shape: f32[8,256], index: 0, kind: input, shape index: {}]   ;;  %s827_s3 = inlined_call_operand.vmem [shape: bf16[128,64], index: 3, kind: input, shape index: {}]   ;;  %s828_s5 = inlined_call_operand.vmem [shape: bf16[64,32], index: 5, kind: input, shape index: {}]   ;;  %s829_s2 = inlined_call_operand.vmem [shape: f32[1,128], index: 2, kind: input, shape index: {}]   ;;  %s830_s4 = inlined_call_operand.vmem [shape: f32[1,64], index: 4, kind: input, shape index: {}]   ;;  %s831_s7 = inlined_call_operand.vmem [shape: bf16[32,10], index: 7, kind: input, shape index: {}]   ;;  %s832_s6 = inlined_call_operand.vmem [shape: f32[1,32], index: 6, kind: input, shape index: {}]   ;;  %s833_s8 = inlined_call_operand.vmem [shape: f32[1,10], index: 8, kind: input, shape index: {}]   ;;  %s834_s9 = inlined_call_operand.vmem [shape: f32[8,10], index: 9, kind: output, shape index: {}]  }
   0x1   :  { %v608_v0 = vld [vmem:[%s825_s1 + $0x40] sm:$0xff]   ;;  %566 = vmatprep.subr.bf16.mxu1 %v642_v1  ;;  %v610_v3 = vld [vmem:[%s825_s1 + $0x48] sm:$0xff]   ;;  %v612_v5 = vld [vmem:[%s825_s1 + $0x50] sm:$0xff]   ;;  %582 = vmatprep.mubr.msk.bf16.mxu1 %vm643_vm0, %v642_v1  ;;  %vm484_vm3 = vcmask 80896  }
   0x2   :  { %v609_v2 = vld [vmem:[%s825_s1] sm:$0xff]   ;;  %527 = vmatprep.subr.bf16.mxu0 %v608_v0  ;;  %v611_v4 = vld [vmem:[%s825_s1 + $0x8] sm:$0xff]   ;;  %v613_v6 = vld [vmem:[%s825_s1 + $0x10] sm:$0xff]  }
   0x3   :  { %528 = vmatpush3.bf16.msra.mxu0 %v609_v2  ;;  %v614_v7 = vld [vmem:[%s825_s1 + $0x58] sm:$0xff]   ;;  %v616_v9 = vld [vmem:[%s825_s1 + $0x60] sm:$0xff]   ;;  %v618_v11 = vld [vmem:[%s825_s1 + $0x68] sm:$0xff]  }
   0x4   :  { %529 = vmatprep.subr.bf16.mxu0 %v610_v3  ;;  %v615_v8 = vld [vmem:[%s825_s1 + $0x18] sm:$0xff]   ;;  %v617_v10 = vld [vmem:[%s825_s1 + $0x20] sm:$0xff]   ;;  %v34_v12 = vld [vmem:[%s826_s0 + $0x8] sm:$0xff] }
   0x5   :  { %v36_v13 = vpack.c.bf16 %v34_v12, %v34_v12  ;;  %v624_v14 = vld [vmem:[%s827_s3] sm:$0xff]   ;;  %v619_v15 = vld [vmem:[%s825_s1 + $0x28] sm:$0xff]   ;;  %v620_v16 = vld [vmem:[%s825_s1 + $0x70] sm:$0xff]  }
   0x6   :  { %567 = vmatpush3.bf16.msra.mxu1 %v624_v14  ;;  %v625_v17 = vld [vmem:[%s827_s3 + $0x8] sm:$0xff]   ;;  %v621_v18 = vld [vmem:[%s825_s1 + $0x30] sm:$0xff]   ;;  %v622_v19 = vld [vmem:[%s825_s1 + $0x78] sm:$0xff]  }
   0x7   :  { %530 = vmatpush3.bf16.msra.mxu0 %v611_v4  ;;  %204 = vmatprep.mubr.bf16.mxu0 %v36_v13  ;;  %v626_v20 = vld [vmem:[%s827_s3 + $0x10] sm:$0xff]   ;;  %v623_v21 = vld [vmem:[%s825_s1 + $0x38] sm:$0xff]   ;;  %v33_v22 = vld [vmem:[%s826_s0] sm:$0xff] }
   0x8   :  { %531 = vmatprep.subr.bf16.mxu0 %v612_v5  ;;  %568 = vmatprep.subr.bf16.mxu1 %v642_v1  ;;  %v627_v23 = vld [vmem:[%s827_s3 + $0x18] sm:$0xff]   ;;  %v35_v24 = vpack.c.bf16 %v33_v22, %v33_v22  ;;  %v628_v25 = vld [vmem:[%s827_s3 + $0x20] sm:$0xff]   ;;  %v629_v26 = vld [vmem:[%s827_s3 + $0x28] sm:$0xff]  }
   0x9   :  { %v630_v27 = vld [vmem:[%s827_s3 + $0x30] sm:$0xff]   ;;  %v631_v28 = vld [vmem:[%s827_s3 + $0x38] sm:$0xff]   ;;  %v632_v29 = vld [vmem:[%s828_s5] sm:$0xff]  }
   0xa   :  { %569 = vmatpush3.bf16.msra.mxu1 %v625_v17  ;;  %v633_v30 = vld [vmem:[%s828_s5 + $0x8] sm:$0xff]   ;;  %v490_v32 = vld [vmem:[%s829_s2] ss:$0 sm:$0xff]  ;;  %v634_v40 = vld [vmem:[%s828_s5 + $0x10] sm:$0xff]  }
   0xb   :  { %532 = vmatpush3.bf16.msra.mxu0 %v613_v6  ;;  %570 = vmatprep.subr.bf16.mxu1 %v642_v1  ;;  %v635_v41 = vld [vmem:[%s828_s5 + $0x18] sm:$0xff]   ;;  %v507_v42 = vld [vmem:[%s830_s4] ss:$0 sm:$0xff]  ;;  %v637_v51 = vld [vmem:[%s831_s7 + $0x8] sm:$0xff]  }
   0xc   :  { %533 = vmatprep.subr.bf16.mxu0 %v614_v7  ;;  %v636_v50 = vld [vmem:[%s831_s7] sm:$0xff]  }
   0xd   :  { %v516_v52 = vld [vmem:[%s832_s6] ss:$0 sm:$0xff] }
   0xe   :  { %571 = vmatpush3.bf16.msra.mxu1 %v626_v20  ;;  %v523_v63 = vld [vmem:[%s833_s8] ss:$0 sm:$0xff] }
   0xf   :  { %534 = vmatpush3.bf16.msra.mxu0 %v615_v8  ;;  %572 = vmatprep.subr.bf16.mxu1 %v642_v1 }
  0x10   :  { %535 = vmatprep.subr.bf16.mxu0 %v616_v9 }
  0x12   :  { %573 = vmatpush3.bf16.msra.mxu1 %v627_v23 }
  0x13   :  { %536 = vmatpush3.bf16.msra.mxu0 %v617_v10  ;;  %574 = vmatprep.subr.bf16.mxu1 %v642_v1 }
  0x14   :  { %537 = vmatprep.subr.bf16.mxu0 %v618_v11 }
  0x16   :  { %575 = vmatpush3.bf16.msra.mxu1 %v628_v25 }
  0x17   :  { %538 = vmatpush3.bf16.msra.mxu0 %v619_v15  ;;  %576 = vmatprep.subr.bf16.mxu1 %v642_v1 }
  0x18   :  { %539 = vmatprep.subr.bf16.mxu0 %v620_v16 }
  0x1a   :  { %577 = vmatpush3.bf16.msra.mxu1 %v629_v26 }
  0x1b   :  { %540 = vmatpush3.bf16.msra.mxu0 %v621_v18  ;;  %578 = vmatprep.subr.bf16.mxu1 %v642_v1 }
  0x1c   :  { %541 = vmatprep.subr.bf16.mxu0 %v622_v19 }
  0x1e   :  { %579 = vmatpush3.bf16.msra.mxu1 %v630_v27 }
  0x1f   :  { %542 = vmatpush3.bf16.msra.mxu0 %v623_v21  ;;  %580 = vmatprep.subr.bf16.mxu1 %v642_v1 }
  0x20   :  { %586 = vmatprep.subr.bf16.mxu0 %v642_v1 }
  0x22   :  { %205 = vmatmul.mubr.bf16.vlgmr.msra.gmra.mrb[0].mxu0 %v35_v24  ;;  %581 = vmatpush3.bf16.msra.mxu1 %v631_v28 }
  0x23   :  { %598 = vmatprep.subr.bf16.mxu1 %v642_v1  ;;  %594 = vmatprep.mubr.msk.bf16.mxu0 %vm643_vm0, %v642_v1 }
  0x24   :  { %587 = vmatpush3.bf16.msra.mxu0 %v632_v29 }
  0x25   :  { %588 = vmatprep.subr.bf16.mxu0 %v642_v1 }
  0x28   :  { %589 = vmatpush3.bf16.msra.mxu0 %v633_v30 }
  0x29   :  { %590 = vmatprep.subr.bf16.mxu0 %v642_v1 }
  0x2c   :  { %591 = vmatpush3.bf16.msra.mxu0 %v634_v40 }
  0x2d   :  { %592 = vmatprep.subr.bf16.mxu0 %v642_v1 }
  0x30   :  { %593 = vmatpush3.bf16.msra.mxu0 %v635_v41 }
  0xf5   :  { %v543_v31 = vpop.f32.mrb[0].mxu0 }
  0xf6   :  { %v544_v33 = vpop.f32.mrb[1].mxu0 }
  0xf7   :  { %v545_v34 = vadd.f32 %v544_v33, %v543_v31  ;;  %v546_v35 = vpop.f32.mrb[2].mxu0 }
  0xf8   :  { %v547_v36 = vpop.f32.mrb[3].mxu0 }
  0xf9   :  { %v207_v37 = vadd.f32 %v545_v34, %v490_v32 }
  0xfb   :  { %v212_v38 = vmax.f32 %v207_v37, 0.0 }
  0xfd   :  { %v213_v39 = vpack.c.bf16 %v212_v38, %v212_v38 }
  0xff   :  { %583 = vmatmul.mubr.bf16.vlgmr.msra.gmra.mrb[0].mxu1 %v213_v39 }
 0x100   :  { %602 = vmatprep.mubr.msk.bf16.mxu1 %vm643_vm0, %v642_v1  ;;  %599 = vmatpush3.bf16.msra.mxu1 %v636_v50 }
 0x101   :  { %600 = vmatprep.subr.bf16.mxu1 %v642_v1 }
 0x104   :  { %601 = vmatpush3.bf16.msra.mxu1 %v637_v51 }
 0x1d2   :  { %v319_v43 = vpop.f32.mrb[0].mxu1 }
 0x1d3   :  { %v320_v44 = vadd.f32 %v507_v42, %v319_v43  ;;  %v584_v45 = vpop.f32.mrb[1].mxu1 }
 0x1d4   :  { %v322_v46 = vpop.f32.mrb[2].mxu1 }
 0x1d5   :  { %v325_v47 = vmax.f32 %v320_v44, 0.0  ;;  %v585_v48 = vpop.f32.mrb[3].mxu1 }
 0x1d7   :  { %v326_v49 = vpack.c.bf16 %v325_v47, %v325_v47 }
 0x1d9   :  { %595 = vmatmul.mubr.msk.bf16.vlgmr.msra.gmra.mrb[4].mxu0 %vm366_vm1, %v326_v49 }
 0x2ac   :  { %v404_v53 = vpop.f32.mrb[4].mxu0 }
 0x2ad   :  { %v405_v54 = vadd.f32 %v516_v52, %v404_v53  ;;  %v596_v55 = vpop.f32.mrb[5].mxu0 }
 0x2ae   :  { %v407_v56 = vpop.f32.mrb[6].mxu0 }
 0x2af   :  { %v522_v57 = vmul.f32 -1.442695, %v405_v54  ;;  %v597_v58 = vpop.f32.mrb[7].mxu0 }
 0x2b1   :  { %638 = vpow2.f32 %v522_v57 }
 0x2bb   :  { %v639_v59 = vpop.eup %638 }
 0x2bc   :  { %v413_v60 = vadd.f32 1.0, %v639_v59 }
 0x2be   :  { %640 = vrcp.f32 %v413_v60 }
 0x2c8   :  { %v641_v61 = vpop.eup %640 }
 0x2c9   :  { %v416_v62 = vpack.c.bf16 %v641_v61, %v641_v61 }
 0x2cb   :  { %603 = vmatmul.mubr.msk.bf16.vlgmr.msra.gmra.mrb[4].mxu1 %vm440_vm2, %v416_v62 }
 0x39e   :  { %v478_v0 = vpop.f32.mrb[4].mxu1 }
 0x39f   :  { %v479_v1 = vadd.f32 %v523_v63, %v478_v0  ;;  %v604_v2 = vpop.f32.mrb[5].mxu1 }
 0x3a0   :  { %v481_v3 = vpop.f32.mrb[6].mxu1 }
 0x3a1   :  { %485 = vst.msk [vmem:[%s834_s9] sm:$0xff] %vm484_vm3, %v479_v1  ;;  %v605_v4 = vpop.f32.mrb[7].mxu1 }

</bundles_post_ra>
